<compile_context>
chip_gen: v5e
topology: v5e:2x2
jax: 0.10.0
libtpu: 0.0.40
codegen_flags: <defaults>
</compile_context>

<pallas_src>
from functools import partial

import jax
import jax.numpy as jnp
from jax.experimental import pallas as pl
from jax.experimental.pallas import tpu as pltpu


# ----------------------------------------------------------------------------
# Kernels
# ----------------------------------------------------------------------------

def _rmsnorm_kernel(x_ref, s_ref, o_ref, *, eps, lowp):
    # x_ref: (ROWS_TILE, DIM)   s_ref: (1, DIM) = 1 + weight (resident block)
    # o_ref: (ROWS_TILE, DIM)
    x = x_ref[...]
    xf = x.astype(jnp.float32)
    ms = jnp.mean(xf * xf, axis=-1, keepdims=True)   # per-row mean of squares (f32)
    inv = jax.lax.rsqrt(ms + eps)
    if lowp:
        # bf16 elementwise path (v6e/v7x): halves VALU-slot pressure vs f32.
        o_ref[...] = (x * inv.astype(x.dtype) * s_ref[...]).astype(o_ref.dtype)
    else:
        o_ref[...] = (xf * inv * s_ref[...].astype(jnp.float32)).astype(o_ref.dtype)


def _sumsq_kernel(x_ref, ss_ref, *, dim, dim_chunk):
    # Pass 1 of the chunked (giant-dim) path: accumulate sum(x^2) over dim chunks.
    j = pl.program_id(1)
    xf = x_ref[...].astype(jnp.float32)
    # Mask columns past `dim` (the last chunk may be ragged -> garbage reads).
    col = jax.lax.broadcasted_iota(jnp.int32, xf.shape, 1) + j * dim_chunk
    xf = jnp.where(col < dim, xf, 0.0)
    part = jnp.sum(xf * xf, axis=-1, keepdims=True)

    @pl.when(j == 0)
    def _():
        ss_ref[...] = jnp.zeros_like(ss_ref)

    ss_ref[...] += part


def _scale_kernel(x_ref, ss_ref, s_ref, o_ref, *, eps, dim, lowp):
    # Pass 2 of the chunked path: scale each chunk by rsqrt(mean + eps).
    x = x_ref[...]
    inv = jax.lax.rsqrt(ss_ref[...] * (1.0 / dim) + eps)
    if lowp:
        o_ref[...] = (x * inv.astype(x.dtype) * s_ref[...]).astype(o_ref.dtype)
    else:
        o_ref[...] = (x.astype(jnp.float32) * inv
                      * s_ref[...].astype(jnp.float32)).astype(o_ref.dtype)


# ----------------------------------------------------------------------------
# Hardware-aware tuning helpers
# ----------------------------------------------------------------------------

def _tpu_generation():
    """Returns (generation string, physical VMEM bytes), with safe fallbacks."""
    kind = ""
    try:
        kind = jax.devices()[0].device_kind.lower()
    except Exception:
        pass
    if "v7" in kind:
        gen = "v7x"
    elif "v6" in kind:
        gen = "v6e"
    elif "v5p" in kind:
        gen = "v5p"
    elif "v5" in kind:
        gen = "v5e"
    elif "v4" in kind:
        gen = "v4"
    else:
        gen = "unknown"
    vmem = 0
    try:
        info = pltpu.get_tpu_info()
        vmem = int(getattr(info, "vmem_capacity_bytes", 0) or 0)
    except Exception:
        vmem = 0
    if vmem <= 0:
        vmem = (64 << 20) if gen in ("v7x", "unknown") else (128 << 20)
    return gen, vmem


def _gen_tuning(gen):
    """(vmem_fraction, per-block byte target, has 2 TensorCores)."""
    if gen == "v7x":
        return 0.60, 7 << 20, True     # 64 MiB VMEM, 3.2 TB/s HBM
    if gen == "v6e":
        return 0.75, 16 << 20, False   # 128 MiB VMEM, 1.4 TB/s HBM
    if gen in ("v5e", "v5p", "v4"):
        return 0.60, 8 << 20, False    # 128 MiB VMEM, 0.82 TB/s HBM
    return 0.60, 6 << 20, False        # unknown: conservative (v7x-sized)


def _choose_rows_tile(rows, dim, itemsize, scale_itemsize,
                      vmem_limit, block_target, two_cores):
    """Sublane-aligned row tile sized by bytes (VMEM budget + per-block target)."""
    sub = max(8, 32 // itemsize)            # 8 f32, 16 bf16, 32 int8/fp8
    # Resident bytes per tile row across the pipeline:
    #   2x input buffers + 2x output buffers (native dtype) + ~2 f32 temps.
    per_row = dim * (4 * itemsize + 8)
    budget = int(vmem_limit * 0.85) - 4 * dim * scale_itemsize
    t_budget = max(sub, budget // per_row) if budget > 0 else sub
    t_block = max(sub, block_target // max(1, dim * itemsize))
    t = max(sub, (min(t_budget, t_block) // sub) * sub)

    if two_cores and t >= rows and rows >= 2 * sub:
        # Everything fits in one block: split so both TensorCores get work.
        half = (rows + 1) // 2
        t = max(sub, ((half + sub - 1) // sub) * sub)

    if t >= rows:
        return rows                         # single full-array block (always legal)

    if two_cores:
        g = -(-rows // t)
        if g % 2 == 1:
            # Nudge the grid count even so neither core idles on the tail step.
            t2 = max(sub, ((-(-rows // (g + 1)) + sub - 1) // sub) * sub)
            if t2 < rows and (-(-rows // t2)) % 2 == 0:
                t = t2
    return t


# ----------------------------------------------------------------------------
# Wrappers
# ----------------------------------------------------------------------------

def _rmsnorm_chunked(x2d, scale, eps, lowp, itemsize, vmem_limit, block_target,
                     force_cols=None):
    """Two-pass fallback when even a minimum-row tile of the full dim cannot fit VMEM."""
    rows, dim = x2d.shape
    sub = max(8, 32 // itemsize)
    rows_tile = min(sub, rows) if rows < sub else sub

    if force_cols is not None:
        dim_chunk = int(force_cols)
    else:
        per_col = sub * (4 * itemsize + 8) + 4 * jnp.dtype(scale.dtype).itemsize
        cap_budget = max(128, int(vmem_limit * 0.85) // per_col)
        cap_block = max(128, block_target // max(1, sub * itemsize))
        dim_chunk = min(cap_budget, cap_block)
    if dim_chunk >= dim:
        dim_chunk = dim
    else:
        dim_chunk = max(128, (dim_chunk // 128) * 128)

    n_r = pl.cdiv(rows, rows_tile)
    n_c = pl.cdiv(dim, dim_chunk)

    sumsq = pl.pallas_call(
        partial(_sumsq_kernel, dim=dim, dim_chunk=dim_chunk),
        out_shape=jax.ShapeDtypeStruct((rows, 1), jnp.float32),
        grid_spec=pltpu.PrefetchScalarGridSpec(
            num_scalar_prefetch=0,
            grid=(n_r, n_c),
            in_specs=[pl.BlockSpec((rows_tile, dim_chunk), lambda i, j: (i, j))],
            out_specs=pl.BlockSpec((rows_tile, 1), lambda i, j: (i, 0)),
        ),
        compiler_params=pltpu.CompilerParams(
            dimension_semantics=("parallel", "arbitrary"),
            vmem_limit_bytes=vmem_limit,
        ),
    )(x2d)

    out2d = pl.pallas_call(
        partial(_scale_kernel, eps=eps, dim=dim, lowp=lowp),
        out_shape=jax.ShapeDtypeStruct((rows, dim), x2d.dtype),
        grid_spec=pltpu.PrefetchScalarGridSpec(
            num_scalar_prefetch=0,
            grid=(n_r, n_c),
            in_specs=[
                pl.BlockSpec((rows_tile, dim_chunk), lambda i, j: (i, j)),
                pl.BlockSpec((rows_tile, 1), lambda i, j: (i, 0)),
                pl.BlockSpec((1, dim_chunk), lambda i, j: (0, j)),
            ],
            out_specs=pl.BlockSpec((rows_tile, dim_chunk), lambda i, j: (i, j)),
        ),
        compiler_params=pltpu.CompilerParams(
            dimension_semantics=("parallel", "parallel"),
            vmem_limit_bytes=vmem_limit,
        ),
    )(x2d, sumsq, scale)
    return out2d


def rmsnorm(x, weight, eps=1e-6, *, _force_chunk_cols=None):
    """x: (..., dim); weight: (dim,). Returns same shape/dtype as x."""
    orig_shape = x.shape
    dim = orig_shape[-1]
    rows = 1
    for s in orig_shape[:-1]:
        rows *= s
    x2d = x.reshape(rows, dim)

    gen, phys_vmem = _tpu_generation()
    frac, block_target, two_cores = _gen_tuning(gen)
    vmem_limit = int(phys_vmem * frac)

    itemsize = jnp.dtype(x.dtype).itemsize
    # Reduced-precision elementwise output path only where bf16 VPU exists.
    lowp = (x.dtype == jnp.bfloat16) and gen not in ("v5e", "v4")
    scale_dtype = x.dtype if lowp else jnp.float32
    # (1 + weight) hoisted to the wrapper; its (1, dim) block stays resident.
    scale = (1.0 + weight.astype(jnp.float32)).astype(scale_dtype).reshape(1, dim)
    scale_itemsize = jnp.dtype(scale_dtype).itemsize

    sub = max(8, 32 // itemsize)
    min_resident = sub * dim * (4 * itemsize + 8) + 4 * dim * scale_itemsize
    if _force_chunk_cols is not None or min_resident > vmem_limit:
        out2d = _rmsnorm_chunked(x2d, scale, eps, lowp, itemsize,
                                 vmem_limit, block_target,
                                 force_cols=_force_chunk_cols)
        return out2d.reshape(orig_shape)

    rows_tile = _choose_rows_tile(rows, dim, itemsize, scale_itemsize,
                                  vmem_limit, block_target, two_cores)
    grid = (pl.cdiv(rows, rows_tile),)

    cost = pl.CostEstimate(
        flops=3 * rows * dim,
        transcendentals=rows,
        bytes_accessed=2 * rows * dim * itemsize + dim * scale_itemsize,
    )

    out2d = pl.pallas_call(
        partial(_rmsnorm_kernel, eps=eps, lowp=lowp),
        out_shape=jax.ShapeDtypeStruct((rows, dim), x.dtype),
        grid_spec=pltpu.PrefetchScalarGridSpec(
            num_scalar_prefetch=0,
            grid=grid,
            in_specs=[
                pl.BlockSpec((rows_tile, dim), lambda i: (i, 0)),
                pl.BlockSpec((1, dim), lambda i: (0, 0)),
            ],
            out_specs=pl.BlockSpec((rows_tile, dim), lambda i: (i, 0)),
        ),
        compiler_params=pltpu.CompilerParams(
            dimension_semantics=("parallel",),
            vmem_limit_bytes=vmem_limit,
        ),
        cost_estimate=cost,
    )(x2d, scale)

    return out2d.reshape(orig_shape)


def rmsnorm_ref(x, weight, eps=1e-6):
    xf = x.astype(jnp.float32)
    inv = jax.lax.rsqrt(jnp.mean(xf * xf, axis=-1, keepdims=True) + eps)
    out = xf * inv * (1.0 + weight.astype(jnp.float32))
    return out.astype(x.dtype)


if __name__ == "__main__":
    key = jax.random.PRNGKey(0)
    batch, seq, hidden = 2, 8, 32
    xk, wk, bk = jax.random.split(key, 3)
    x = jax.random.normal(xk, (batch, seq, hidden), dtype=jnp.float32)
    # PyTorch module initializes weight to zeros; perturb deterministically so
    # the (1 + weight) scaling path is exercised.
    weight = 0.1 * jax.random.normal(wk, (hidden,), dtype=jnp.float32)

    out = jax.block_until_ready(rmsnorm(x, weight))
    ref = rmsnorm_ref(x, weight)
    assert out.shape == x.shape and out.dtype == x.dtype
    assert jnp.allclose(out, ref, atol=1e-5, rtol=1e-5), "mismatch vs reference"

    # Ragged last row-block (rows not a multiple of the sublane row tile):
    # no host-side pad/slice, relies on masked OOB writes.
    x2 = jax.random.normal(jax.random.PRNGKey(1), (3, 5, hidden), dtype=jnp.float32)
    out2 = jax.block_until_ready(rmsnorm(x2, weight))
    assert jnp.allclose(out2, rmsnorm_ref(x2, weight), atol=1e-5, rtol=1e-5), \
        "mismatch vs reference (ragged rows)"

    # bf16 path (reduced-precision elementwise on v6e/v7x; full f32 on v5e).
    xb = jax.random.normal(bk, (4, 8, 128), dtype=jnp.bfloat16)
    wb = 0.1 * jax.random.normal(wk, (128,), dtype=jnp.float32)
    outb = jax.block_until_ready(rmsnorm(xb, wb))
    refb = rmsnorm_ref(xb, wb)
    assert outb.shape == xb.shape and outb.dtype == xb.dtype
    assert jnp.allclose(outb.astype(jnp.float32), refb.astype(jnp.float32),
                        atol=5e-2, rtol=5e-2), "mismatch vs reference (bf16)"

    # Chunked two-pass fallback (giant-dim guard), exercised at a small shape
    # by forcing the column chunk size (384 cols -> chunks of 256, ragged tail).
    x3 = jax.random.normal(jax.random.PRNGKey(2), (13, 384), dtype=jnp.float32)
    w3 = 0.05 * jax.random.normal(jax.random.PRNGKey(3), (384,), dtype=jnp.float32)
    out3 = jax.block_until_ready(rmsnorm(x3, w3, _force_chunk_cols=256))
    assert jnp.allclose(out3, rmsnorm_ref(x3, w3), atol=1e-5, rtol=1e-5), \
        "mismatch vs reference (chunked fallback)"

    print("KERNEL_OK")
</pallas_src>

<mosaic_0001>
module attributes {stable_mosaic.version = 11 : i64} {
  func.func @_rmsnorm_kernel(%arg0: i32, %arg1: memref<16x32xf32, #tpu.memory_space<vmem>>, %arg2: memref<1x32xf32, #tpu.memory_space<vmem>>, %arg3: memref<16x32xf32, #tpu.memory_space<vmem>>) attributes {dimension_semantics = [#tpu.dimension_semantics<parallel>], iteration_bounds = array<i64: 1>, scalar_prefetch = 0 : i64, scratch_operands = 0 : i64, tpu.core_type = #tpu.core_type<tc>, window_params = [{transform_indices = @transform_0, window_bounds = array<i64: 16, 32>}, {pipeline_mode = #tpu.pipeline_mode<synchronous>, transform_indices = @transform_1, window_bounds = array<i64: 1, 32>}, {transform_indices = @transform_2, window_bounds = array<i64: 16, 32>}]} {
    %c0 = arith.constant 0 : index
    %c0_0 = arith.constant 0 : index
    %0 = vector.load %arg1[%c0, %c0_0] : memref<16x32xf32, #tpu.memory_space<vmem>>, vector<16x32xf32>
    %1 = arith.mulf %0, %0 : vector<16x32xf32>
    %cst = arith.constant dense<0.000000e+00> : vector<16xf32>
    %2 = vector.multi_reduction <add>, %1, %cst [1] : vector<16x32xf32> to vector<16xf32>
    %3 = vector.shape_cast %2 : vector<16xf32> to vector<16x1xf32>
    %cst_1 = arith.constant 3.200000e+01 : f32
    %4 = vector.broadcast %cst_1 : f32 to vector<16x1xf32>
    %5 = arith.divf %3, %4 : vector<16x1xf32>
    %cst_2 = arith.constant 9.99999997E-7 : f32
    %6 = vector.broadcast %cst_2 : f32 to vector<16x1xf32>
    %7 = arith.addf %5, %6 : vector<16x1xf32>
    %8 = math.rsqrt %7 : vector<16x1xf32>
    %9 = vector.broadcast %8 : vector<16x1xf32> to vector<16x32xf32>
    %10 = arith.mulf %0, %9 : vector<16x32xf32>
    %c0_3 = arith.constant 0 : index
    %c0_4 = arith.constant 0 : index
    %11 = vector.load %arg2[%c0_3, %c0_4] : memref<1x32xf32, #tpu.memory_space<vmem>>, vector<1x32xf32>
    %12 = vector.broadcast %11 : vector<1x32xf32> to vector<16x32xf32>
    %13 = arith.mulf %10, %12 : vector<16x32xf32>
    %c0_5 = arith.constant 0 : index
    %c0_6 = arith.constant 0 : index
    %14 = vector.load %arg3[%c0_5, %c0_6] : memref<16x32xf32, #tpu.memory_space<vmem>>, vector<16x32xf32>
    tpu.vector_store %arg3[%c0_5, %c0_6], %13 {strides = array<i32>} : memref<16x32xf32, #tpu.memory_space<vmem>>, vector<16x32xf32>,
    return
  }
  func.func @transform_0(%arg0: i32) -> (i32, i32) {
    %c0_i32 = arith.constant 0 : i32
    %c0_i32_0 = arith.constant 0 : i32
    return %arg0, %c0_i32 : i32, i32
  }
  func.func @transform_1(%arg0: i32) -> (i32, i32) {
    %c0_i32 = arith.constant 0 : i32
    %c0_i32_0 = arith.constant 0 : i32
    %c0_i32_1 = arith.constant 0 : i32
    return %c0_i32, %c0_i32_0 : i32, i32
  }
  func.func @transform_2(%arg0: i32) -> (i32, i32) {
    %c0_i32 = arith.constant 0 : i32
    %c0_i32_0 = arith.constant 0 : i32
    return %arg0, %c0_i32 : i32, i32
  }
}

</mosaic_0001>

<bundles_post_ra>
// kernel: tpu_custom_call.1
= control target key start
LH: loop header
LB: loop body
LE: loop exit
PB: predicated region body
PF: predicated region fallthrough
CT: control target
= control target key end

     0   :  { %7 = vsyncpa [#allocation3], 0  ;;  %s245_s0 = inlined_call_operand.hbm [shape: f32[16,32], index: 0, kind: input, shape index: {}]   ;;  %s246_s1 = inlined_call_operand.hbm [shape: f32[1,32], index: 1, kind: input, shape index: {}]   ;;  %s247_s2 = inlined_call_operand.hbm [shape: f32[16,32], index: 2, kind: output, shape index: {}]  }
   0x1   :  { %8 = vsyncpa [#allocation6], 0 }
   0x2   :  { %9 = vsyncpa [#allocation4], 0  ;;  %s14_s11 = sshll.u32 %s245_s0, 4  ;;  %s205_s12 = smov [#allocation2]   ;;  %s15_s11 = int_to_ptr.hbm [resolvable:$true] %s14_s11 }
   0x3   :  { %s16_s13 = sshll.u32 %s205_s12, 4  ;;  %s28_s16 = sshll.u32 %s246_s1, 4  ;;  %s17_s13 = int_to_ptr.vmem [resolvable:$true] %s16_s13  ;;  %s29_s16 = int_to_ptr.hbm [resolvable:$true] %s28_s16 }
   0x4   :  { %s206_s17 = smov 128   ;;  %s207_s18 = smov 8  }
   0x5   :  { %22 = dma.hbm_to_vmem [thread:$0]  %s15_s11, 256, %s17_s13, [#allocation3], %s206_s17, %s206_s17, %s207_s18  }
   0x6   :  { %s208_s19 = smov [#allocation5]  }
   0x7   :  { %s30_s20 = sshll.u32 %s208_s19, 4  ;;  %s31_s20 = int_to_ptr.vmem [resolvable:$true] %s30_s20 }
   0x8   :  { %33 = dma.hbm_to_vmem [thread:$0]  %s29_s16, 16, %s31_s20, [#allocation6]  }
   0x9   :  { %199 = dma.done.wait [#allocation3], 256  }
   0xa   :  { %200 = vsyncadd [#allocation3], 4294967040 }
   0xb   :  { %201 = dma.done.wait [#allocation6], 16  }
   0xc   :  { %202 = vsyncadd [#allocation6], 4294967280  ;;  %v42_v0 = vld [vmem:[#allocation2] sm:$0xff]  ;;  %vm46_vm0 = vcmask 261120   ;;  %v43_v2 = vld [vmem:[#allocation2 + $0x8] sm:$0xff]  ;;  %v209_v6 = vmov 32.0  }
   0xd   :  { %v44_v1 = vmul.f32 %v42_v0, %v42_v0  ;;  %v45_v4 = vmul.f32 %v43_v2, %v43_v2  ;;  %121 = vrcp.f32 %v209_v6  ;;  %v120_v27 = vld [vmem:[#allocation5] ss:$0 sm:$0xff]  ;;  %s210_s0 = smov [#allocation7]   ;;  %s100_s23 = sshll.u32 %s247_s2, 4  ;;  %s101_s23 = int_to_ptr.hbm [resolvable:$true] %s100_s23 }
   0xe   :  { %s98_s1 = sshll.u32 %s210_s0, 4  ;;  %s99_s1 = int_to_ptr.vmem [resolvable:$true] %s98_s1 }
   0xf   :  { %v47_v3 = vsel %vm46_vm0, %v44_v1, 0.0  ;;  %v50_v5 = vsel %vm46_vm0, %v45_v4, 0.0 }
  0x10   :  { %48 = vadd.xlane.f32.xlu0 %v47_v3 }
  0x13   :  { %v122_v7 = vpop.eup %121 }
  0x14   :  { %v54_v8 = vmul.f32 32.0, %v122_v7  ;;  %vm58_vm1 = vweird.f32 %v122_v7 }
  0x16   :  { %v55_v9 = vsub.f32 1.0, %v54_v8 }
  0x18   :  { %51 = vadd.xlane.f32.xlu0 %v50_v5  ;;  %v56_v10 = vmul.f32 %v122_v7, %v55_v9 }
  0x1a   :  { %v57_v11 = vadd.f32 %v122_v7, %v56_v10 }
  0x1c   :  { %v59_v12 = vsel %vm58_vm1, %v122_v7, %v57_v11 }
  0x83   :  { %v49_v13 = vpop.xlane.xlu0 %48 }
  0x84   :  { %v60_v14 = vmul.f32 %v59_v12, %v49_v13 }
  0x86   :  { %v62_v15 = vadd.f32 1e-06, %v60_v14 }
  0x88   :  { %123 = vrsqrt.f32 %v62_v15  ;;  %vm70_vm3 = vweird.f32 %v62_v15 }
  0x8b   :  { %v52_v16 = vpop.xlane.xlu0 %51 }
  0x8c   :  { %v61_v17 = vmul.f32 %v59_v12, %v52_v16 }
  0x8e   :  { %v124_v18 = vpop.eup %123  ;;  %v63_v19 = vadd.f32 1e-06, %v61_v17 }
  0x8f   :  { %v65_v20 = vmul.f32 %v124_v18, %v62_v15  ;;  %vm71_vm2 = vweird.f32 %v124_v18 }
  0x90   :  { %125 = vrsqrt.f32 %v63_v19  ;;  %vm72_vm4 = vmor %vm70_vm3, %vm71_vm2  ;;  %vm80_vm6 = vweird.f32 %v63_v19 }
  0x91   :  { %v66_v21 = vmul.f32 %v124_v18, %v65_v20 }
  0x93   :  { %v67_v22 = vmul.f32 0.5, %v66_v21 }
  0x95   :  { %v68_v23 = vsub.f32 1.5, %v67_v22 }
  0x96   :  { %v126_v24 = vpop.eup %125 }
  0x97   :  { %v69_v25 = vmul.f32 %v124_v18, %v68_v23  ;;  %v75_v26 = vmul.f32 %v126_v24, %v63_v19  ;;  %vm81_vm5 = vweird.f32 %v126_v24 }
  0x98   :  { %vm82_vm7 = vmor %vm80_vm6, %vm81_vm5 }
  0x99   :  { %v73_v28 = vsel %vm72_vm4, %v124_v18, %v69_v25  ;;  %v76_v29 = vmul.f32 %v126_v24, %v75_v26 }
  0x9a   :  { %v84_v30 = vmul.f32 %v73_v28, %v42_v0 }
  0x9b   :  { %v77_v31 = vmul.f32 0.5, %v76_v29 }
  0x9c   :  { %v90_v32 = vmul.f32 %v120_v27, %v84_v30 }
  0x9d   :  { %v78_v33 = vsub.f32 1.5, %v77_v31 }
  0x9e   :  { %92 = vst.msk [vmem:[#allocation7] sm:$0xff] %vm46_vm0, %v90_v32 }
  0x9f   :  { %v79_v34 = vmul.f32 %v126_v24, %v78_v33 }
  0xa1   :  { %v83_v35 = vsel %vm82_vm7, %v126_v24, %v79_v34 }
  0xa2   :  { %v85_v36 = vmul.f32 %v83_v35, %v43_v2 }
  0xa4   :  { %v91_v37 = vmul.f32 %v120_v27, %v85_v36 }
  0xa6   :  { %93 = vst.msk [vmem:[#allocation7 + $0x8] sm:$0xff] %vm46_vm0, %v91_v37 }
  0xa7   :  { %106 = dma.vmem_to_hbm [thread:$0]  %s99_s1, 256, %s101_s23, [#allocation4], %s206_s17, %s206_s17, %s207_s18  }
  0xa8   :  { %203 = dma.done.wait [#allocation4], 256  }
  0xa9   :  { %204 = vsyncadd [#allocation4], 4294967040 }
  0xaa   :  { %111 = vsyncpa [#allocation3], 1 }
  0xab   :  { %112 = vsyncpa [#allocation6], 1 }
  0xac   :  { %113 = vsyncpa [#allocation4], 1 }

</bundles_post_ra>
